<compile_context>
chip_gen: v6e
topology: v6e:2x2x1
jax: 0.10.0
libtpu: 0.0.40
codegen_flags: <defaults>
</compile_context>

<pallas_src>
import numpy as np
import jax
import jax.numpy as jnp
from jax.experimental import pallas as pl
from jax.experimental.pallas import tpu as pltpu


ALPHA = 0.7   # Tversky false-negative weight
BETA = 0.3    # Tversky false-positive weight
SMOOTH = 1.0


# ----------------------------------------------------------------------------- kernel ---
def _mask_loss_kernel(tgt_ref, fcat_ref, kblk_ref, loss_ref):
    """Fused MaskHead loss (both levels).

    tgt_ref : (N, HW)                 f32  flattened binary target masks
    fcat_ref: (N, h0w0 + h1w1)        f32  concatenated level-'0' / level-'1' logits
    kblk_ref: (h0w0 + h1w1, 2*HW)     f32  block-diag Kronecker interp matrices, *0.5 folded in
    loss_ref: (1, 1)                  f32  scalar output: 0.5 * (loss0 + loss1)
    """
    t = tgt_ref[...]                                   # (N, HW)
    n, hw = t.shape                                    # static
    count = float(n * hw)                              # element count per level
    s_t = jnp.sum(t, keepdims=True)                    # (1, 1) — shared by both levels

    # One block-diagonal, lane-dense MXU matmul upsamples both levels at once.
    # The 0.5 pre-tanh scale is already folded into kblk (host-side constant).
    up = jnp.dot(fcat_ref[...], kblk_ref[...],
                 preferred_element_type=jnp.float32)   # (N, 2*HW) = [0.5*up0 | 0.5*up1]
    th = jnp.tanh(up)                                  # EUP; sigmoid(x) = 0.5*(tanh(x/2)+1)

    def level_loss(th_l):
        # Post-reduction scalar algebra: no full-size +1.0 / *0.5 passes.
        s_th = jnp.sum(th_l, keepdims=True)            # (1, 1)
        s_tht = jnp.sum(th_l * t, keepdims=True)        # (1, 1)
        tp = 0.5 * (s_tht + s_t)                        # sum(p * t)
        s_p = 0.5 * (s_th + count)                      # sum(p)
        fp = s_p - tp
        fn = s_t - tp
        tversky = (tp + SMOOTH) / (tp + ALPHA * fn + BETA * fp + SMOOTH)
        return 1.0 - tversky

    loss0 = level_loss(th[:, :hw])                     # lane-aligned static slices
    loss1 = level_loss(th[:, hw:])
    loss_ref[...] = 0.5 * (loss0 + loss1)


def _fused_mask_loss(tgt_flat, fcat, k_blk):
    vmem = pl.BlockSpec(memory_space=pltpu.MemorySpace.VMEM)
    loss = pl.pallas_call(
        _mask_loss_kernel,
        out_shape=jax.ShapeDtypeStruct((1, 1), jnp.float32),
        in_specs=[vmem, vmem, vmem],
        out_specs=vmem,
    )(tgt_flat, fcat, k_blk)
    return loss[0, 0]


# ------------------------------------------------------ host-side constants (numpy, cached) ---
def _interp_matrix_np(out_size, in_size):
    """Row-interpolation matrix reproducing F.interpolate(mode='bilinear',
    align_corners=False) along one axis."""
    scale = in_size / out_size
    i = np.arange(out_size, dtype=np.float64)
    src = np.maximum(scale * (i + 0.5) - 0.5, 0.0)      # PyTorch clamps negative src to 0
    i0 = np.clip(np.floor(src).astype(np.int64), 0, in_size - 1)
    i1 = np.minimum(i0 + 1, in_size - 1)
    w1 = src - i0
    w0 = 1.0 - w1
    m = np.zeros((out_size, in_size), np.float64)
    rows = np.arange(out_size)
    np.add.at(m, (rows, i0), w0)
    np.add.at(m, (rows, i1), w1)
    return m


def _kron_interp_matrix_np(h_out, w_out, h_in, w_in):
    """K[(i*w_in+j), (h*w_out+w)] = Ry[h,i] * Rx[w,j]; flatten(up(a)) == flatten(a) @ K."""
    ry = _interp_matrix_np(h_out, h_in)                  # (H, h_in)
    rx = _interp_matrix_np(w_out, w_in)                  # (W, w_in)
    return np.einsum('hi,wj->ijhw', ry, rx).reshape(h_in * w_in, h_out * w_out)


def _block_diag_interp_np(h, w, level_shapes):
    """Block-diagonal [0.5*K0, 0.5*K1] of shape (h0w0+h1w1, 2*HW). The 0.5 folds the
    sigmoid's tanh(x/2) scale into a compile-time constant."""
    blocks = [0.5 * _kron_interp_matrix_np(h, w, hi, wi) for (hi, wi) in level_shapes]
    k_in = sum(b.shape[0] for b in blocks)
    hw = h * w
    k_blk = np.zeros((k_in, len(blocks) * hw), np.float32)
    r = 0
    for li, b in enumerate(blocks):
        k_blk[r:r + b.shape[0], li * hw:(li + 1) * hw] = b
        r += b.shape[0]
    return k_blk


# ------------------------------------------------------------------- jitted forward path ---
@jax.jit
def _forward_impl(targets, feat0, feat1, k_blk):
    n, _, h, w = targets.shape
    tgt_flat = targets[:, 0].astype(jnp.float32).reshape(n, h * w)       # (N, HW)
    f0 = feat0[:, 0].astype(jnp.float32).reshape(n, -1)                  # (N, h0*w0)
    f1 = feat1[:, 0].astype(jnp.float32).reshape(n, -1)                  # (N, h1*w1)
    fcat = jnp.concatenate([f0, f1], axis=1)                             # (N, h0w0+h1w1)
    return _fused_mask_loss(tgt_flat, fcat, k_blk)


class MaskHeadPallas:
    """JAX/Pallas port of MaskHead. fusion_conv is initialized (as in __init__) but,
    exactly like the PyTorch forward, it is not used in the forward pass."""

    def __init__(self, in_channels=4, channels=1, key=None):
        key = jax.random.PRNGKey(42) if key is None else key
        kw, _ = jax.random.split(key)
        fan_in = in_channels * 1 * 1
        bound = 1.0 / np.sqrt(fan_in)
        # Conv2d(in_channels, 1, kernel_size=1) params — deterministic synthetic init.
        self.fusion_conv_weight = jax.random.uniform(
            kw, (1, in_channels, 1, 1), jnp.float32, -bound, bound)
        self.fusion_conv_bias = jnp.zeros((1,), jnp.float32)
        # Cache of block-diagonal interpolation constants, keyed by shape tuple.
        self._k_cache = {}

    def _get_k_blk(self, h, w, shape0, shape1):
        key = (h, w, shape0, shape1)
        k = self._k_cache.get(key)
        if k is None:
            k = jnp.asarray(_block_diag_interp_np(h, w, [shape0, shape1]))  # device-resident
            self._k_cache[key] = k
        return k

    def forward(self, targets, mask_features):
        # targets: (N, 1, H, W); mask_features: dict name -> (N, 1, h, w)
        h, w = targets.shape[-2:]
        feat0 = mask_features['0']
        feat1 = mask_features['1']
        k_blk = self._get_k_blk(h, w, tuple(feat0.shape[-2:]), tuple(feat1.shape[-2:]))
        loss = _forward_impl(targets, feat0, feat1, k_blk)
        return {'loss_mask': loss}


# ------------------------------------------------------------------------- reference ---
def _reference_forward(targets, mask_features):
    """Pure-JAX reference using the separable (Ry @ a @ Rx^T) interpolation."""
    n, _, h, w = targets.shape
    tgt = targets[:, 0].astype(jnp.float32)
    loss_mask = {}
    for name, ms in mask_features.items():
        h_in, w_in = ms.shape[-2:]
        ry = jnp.asarray(_interp_matrix_np(h, h_in), jnp.float32)
        rx = jnp.asarray(_interp_matrix_np(w, w_in), jnp.float32)
        feat = ms[:, 0].astype(jnp.float32)
        up = jnp.einsum('hi,nij,wj->nhw', ry, feat, rx)
        p = jax.nn.sigmoid(up)
        tp = jnp.sum(p * tgt)
        fp = jnp.sum(p * (1.0 - tgt))
        fn = jnp.sum((1.0 - p) * tgt)
        loss_mask[name] = 1.0 - (tp + SMOOTH) / (tp + ALPHA * fn + BETA * fp + SMOOTH)
    return {'loss_mask': 0.5 * (loss_mask['0'] + loss_mask['1'])}


# ------------------------------------------------------------------------------ main ---
if __name__ == "__main__":
    key = jax.random.PRNGKey(0)
    k_t, k_f0, k_f1, k_p = jax.random.split(key, 4)

    N, H, W = 2, 16, 16
    targets = (jax.random.uniform(k_t, (N, 1, H, W)) > 0.5).astype(jnp.float32)
    mask_features = {
        '0': jax.random.normal(k_f0, (N, 1, 8, 8), jnp.float32),
        '1': jax.random.normal(k_f1, (N, 1, 4, 4), jnp.float32),
    }

    head = MaskHeadPallas(in_channels=4, channels=1, key=k_p)
    out = head.forward(targets, mask_features)
    loss = jax.block_until_ready(out['loss_mask'])

    ref = _reference_forward(targets, mask_features)['loss_mask']
    assert jnp.allclose(loss, ref, rtol=1e-4, atol=1e-5), (loss, ref)

    print("KERNEL_OK")
</pallas_src>

<mosaic_0001>
module attributes {stable_mosaic.version = 11 : i64} {
  func.func @_mask_loss_kernel(%arg0: memref<2x256xf32, #tpu.memory_space<vmem>>, %arg1: memref<2x80xf32, #tpu.memory_space<vmem>>, %arg2: memref<80x512xf32, #tpu.memory_space<vmem>>, %arg3: memref<1x1xf32, #tpu.memory_space<vmem>>) attributes {dimension_semantics = [], scalar_prefetch = 0 : i64, scratch_operands = 0 : i64, tpu.core_type = #tpu.core_type<tc>} {
    %c0 = arith.constant 0 : index
    %c0_0 = arith.constant 0 : index
    %0 = vector.load %arg0[%c0, %c0_0] : memref<2x256xf32, #tpu.memory_space<vmem>>, vector<2x256xf32>
    %1 = vector.shape_cast %0 : vector<2x256xf32> to vector<1x2x256xf32>
    %cst = arith.constant dense<0.000000e+00> : vector<1xf32>
    %2 = vector.multi_reduction <add>, %1, %cst [1, 2] : vector<1x2x256xf32> to vector<1xf32>
    %3 = vector.shape_cast %2 : vector<1xf32> to vector<1x1x1xf32>
    %4 = vector.extract %3[0, 0, 0] : f32 from vector<1x1x1xf32>
    %5 = vector.broadcast %4 : f32 to vector<1x1xf32>
    %c0_1 = arith.constant 0 : index
    %c0_2 = arith.constant 0 : index
    %6 = vector.load %arg1[%c0_1, %c0_2] : memref<2x80xf32, #tpu.memory_space<vmem>>, vector<2x80xf32>
    %c0_3 = arith.constant 0 : index
    %c0_4 = arith.constant 0 : index
    %7 = vector.load %arg2[%c0_3, %c0_4] : memref<80x512xf32, #tpu.memory_space<vmem>>, vector<80x512xf32>
    %cst_5 = arith.constant dense<0.000000e+00> : vector<2x512xf32>
    %8 = tpu.matmul %6, %7, %cst_5 {dimension_numbers = #tpu.dot_dimension_numbers<[1], [0], [0], [1], [0, 0, 1, 1], [], []>} : vector<2x80xf32>, vector<80x512xf32>, vector<2x512xf32> -> vector<2x512xf32>
    %9 = math.tanh %8 : vector<2x512xf32>
    %10 = vector.extract_strided_slice %9 {offsets = [0, 0], sizes = [2, 256], strides = [1, 1]} : vector<2x512xf32> to vector<2x256xf32>
    %11 = vector.shape_cast %10 : vector<2x256xf32> to vector<1x2x256xf32>
    %cst_6 = arith.constant dense<0.000000e+00> : vector<1xf32>
    %12 = vector.multi_reduction <add>, %11, %cst_6 [1, 2] : vector<1x2x256xf32> to vector<1xf32>
    %13 = vector.shape_cast %12 : vector<1xf32> to vector<1x1x1xf32>
    %14 = vector.extract %13[0, 0, 0] : f32 from vector<1x1x1xf32>
    %15 = vector.broadcast %14 : f32 to vector<1x1xf32>
    %16 = arith.mulf %10, %0 : vector<2x256xf32>
    %17 = vector.shape_cast %16 : vector<2x256xf32> to vector<1x2x256xf32>
    %cst_7 = arith.constant dense<0.000000e+00> : vector<1xf32>
    %18 = vector.multi_reduction <add>, %17, %cst_7 [1, 2] : vector<1x2x256xf32> to vector<1xf32>
    %19 = vector.shape_cast %18 : vector<1xf32> to vector<1x1x1xf32>
    %20 = vector.extract %19[0, 0, 0] : f32 from vector<1x1x1xf32>
    %21 = vector.broadcast %20 : f32 to vector<1x1xf32>
    %22 = arith.addf %21, %5 : vector<1x1xf32>
    %cst_8 = arith.constant 5.000000e-01 : f32
    %23 = vector.broadcast %cst_8 : f32 to vector<1x1xf32>
    %24 = arith.mulf %23, %22 : vector<1x1xf32>
    %cst_9 = arith.constant 5.120000e+02 : f32
    %25 = vector.broadcast %cst_9 : f32 to vector<1x1xf32>
    %26 = arith.addf %15, %25 : vector<1x1xf32>
    %cst_10 = arith.constant 5.000000e-01 : f32
    %27 = vector.broadcast %cst_10 : f32 to vector<1x1xf32>
    %28 = arith.mulf %27, %26 : vector<1x1xf32>
    %29 = arith.subf %28, %24 : vector<1x1xf32>
    %30 = arith.subf %5, %24 : vector<1x1xf32>
    %cst_11 = arith.constant 1.000000e+00 : f32
    %31 = vector.broadcast %cst_11 : f32 to vector<1x1xf32>
    %32 = arith.addf %24, %31 : vector<1x1xf32>
    %cst_12 = arith.constant 0.699999988 : f32
    %33 = vector.broadcast %cst_12 : f32 to vector<1x1xf32>
    %34 = arith.mulf %33, %30 : vector<1x1xf32>
    %35 = arith.addf %24, %34 : vector<1x1xf32>
    %cst_13 = arith.constant 3.000000e-01 : f32
    %36 = vector.broadcast %cst_13 : f32 to vector<1x1xf32>
    %37 = arith.mulf %36, %29 : vector<1x1xf32>
    %38 = arith.addf %35, %37 : vector<1x1xf32>
    %cst_14 = arith.constant 1.000000e+00 : f32
    %39 = vector.broadcast %cst_14 : f32 to vector<1x1xf32>
    %40 = arith.addf %38, %39 : vector<1x1xf32>
    %41 = arith.divf %32, %40 : vector<1x1xf32>
    %cst_15 = arith.constant 1.000000e+00 : f32
    %42 = vector.broadcast %cst_15 : f32 to vector<1x1xf32>
    %43 = arith.subf %42, %41 : vector<1x1xf32>
    %44 = vector.extract_strided_slice %9 {offsets = [0, 256], sizes = [2, 256], strides = [1, 1]} : vector<2x512xf32> to vector<2x256xf32>
    %45 = vector.shape_cast %44 : vector<2x256xf32> to vector<1x2x256xf32>
    %cst_16 = arith.constant dense<0.000000e+00> : vector<1xf32>
    %46 = vector.multi_reduction <add>, %45, %cst_16 [1, 2] : vector<1x2x256xf32> to vector<1xf32>
    %47 = vector.shape_cast %46 : vector<1xf32> to vector<1x1x1xf32>
    %48 = vector.extract %47[0, 0, 0] : f32 from vector<1x1x1xf32>
    %49 = vector.broadcast %48 : f32 to vector<1x1xf32>
    %50 = arith.mulf %44, %0 : vector<2x256xf32>
    %51 = vector.shape_cast %50 : vector<2x256xf32> to vector<1x2x256xf32>
    %cst_17 = arith.constant dense<0.000000e+00> : vector<1xf32>
    %52 = vector.multi_reduction <add>, %51, %cst_17 [1, 2] : vector<1x2x256xf32> to vector<1xf32>
    %53 = vector.shape_cast %52 : vector<1xf32> to vector<1x1x1xf32>
    %54 = vector.extract %53[0, 0, 0] : f32 from vector<1x1x1xf32>
    %55 = vector.broadcast %54 : f32 to vector<1x1xf32>
    %56 = arith.addf %55, %5 : vector<1x1xf32>
    %cst_18 = arith.constant 5.000000e-01 : f32
    %57 = vector.broadcast %cst_18 : f32 to vector<1x1xf32>
    %58 = arith.mulf %57, %56 : vector<1x1xf32>
    %cst_19 = arith.constant 5.120000e+02 : f32
    %59 = vector.broadcast %cst_19 : f32 to vector<1x1xf32>
    %60 = arith.addf %49, %59 : vector<1x1xf32>
    %cst_20 = arith.constant 5.000000e-01 : f32
    %61 = vector.broadcast %cst_20 : f32 to vector<1x1xf32>
    %62 = arith.mulf %61, %60 : vector<1x1xf32>
    %63 = arith.subf %62, %58 : vector<1x1xf32>
    %64 = arith.subf %5, %58 : vector<1x1xf32>
    %cst_21 = arith.constant 1.000000e+00 : f32
    %65 = vector.broadcast %cst_21 : f32 to vector<1x1xf32>
    %66 = arith.addf %58, %65 : vector<1x1xf32>
    %cst_22 = arith.constant 0.699999988 : f32
    %67 = vector.broadcast %cst_22 : f32 to vector<1x1xf32>
    %68 = arith.mulf %67, %64 : vector<1x1xf32>
    %69 = arith.addf %58, %68 : vector<1x1xf32>
    %cst_23 = arith.constant 3.000000e-01 : f32
    %70 = vector.broadcast %cst_23 : f32 to vector<1x1xf32>
    %71 = arith.mulf %70, %63 : vector<1x1xf32>
    %72 = arith.addf %69, %71 : vector<1x1xf32>
    %cst_24 = arith.constant 1.000000e+00 : f32
    %73 = vector.broadcast %cst_24 : f32 to vector<1x1xf32>
    %74 = arith.addf %72, %73 : vector<1x1xf32>
    %75 = arith.divf %66, %74 : vector<1x1xf32>
    %cst_25 = arith.constant 1.000000e+00 : f32
    %76 = vector.broadcast %cst_25 : f32 to vector<1x1xf32>
    %77 = arith.subf %76, %75 : vector<1x1xf32>
    %78 = arith.addf %43, %77 : vector<1x1xf32>
    %cst_26 = arith.constant 5.000000e-01 : f32
    %79 = vector.broadcast %cst_26 : f32 to vector<1x1xf32>
    %80 = arith.mulf %79, %78 : vector<1x1xf32>
    %c0_27 = arith.constant 0 : index
    %c0_28 = arith.constant 0 : index
    %81 = vector.load %arg3[%c0_27, %c0_28] : memref<1x1xf32, #tpu.memory_space<vmem>>, vector<1x1xf32>
    tpu.vector_store %arg3[%c0_27, %c0_28], %80 {strides = array<i32>} : memref<1x1xf32, #tpu.memory_space<vmem>>, vector<1x1xf32>,
    return
  }
}

</mosaic_0001>

<bundles_post_ra>
// kernel: squeeze.6
= control target key start
LH: loop header
LB: loop body
LE: loop exit
PB: predicated region body
PF: predicated region fallthrough
CT: control target
= control target key end

     0   :  { %2 = vsyncpa [#allocation1], 0  ;;  %s81_s6 = smov [#allocation0]   ;;  %s101_s0 = inlined_call_operand.hbm [shape: f32[2,1,4,4], index: 0, kind: input, shape index: {}]   ;;  %s102_s1 = inlined_call_operand.vmem [shape: f32[2,16], index: 1, kind: output, shape index: {}]  }
   0x1   :  { %s7_s7 = sshll.u32 %s81_s6, 4  ;;  %s8_s7 = int_to_ptr.vmem [resolvable:$true] %s7_s7 }
   0x2   :  { %s67_s8 = scalar_lea.vmem %s8_s7, 128  ;;  %p72_p1 = scmp.lt.s32.totalorder %s8_s7, %s8_s7 }
   0x3   :  { %p68_p0 = scmp.ne.s32.totalorder %s8_s7, %s67_s8  ;;  %p73_p2 = scmp.lt.s32.totalorder %s67_s8, %s67_s8 }
   0x5   :  { %p74_p3 = por %p73_p2, %p72_p1 }
   0x7   :  { %p75_p4 = pnand %p74_p3, %p68_p0 }
   0x9   :  { %78 = shalt.err (!%p75_p4)
}
   0xa   :  { %10 = dma.hbm_to_vmem [thread:$0]  %s101_s0, 128, %s8_s7, [#allocation1]  }
   0xb   :  { %79 = dma.done.wait [#allocation1], 128  }
   0xc   :  { %80 = vsyncadd [#allocation1], 4294967168  ;;  %v16_v0 = vld [vmem:[#allocation0 + $0x4] sm:$0xf]  ;;  %v19_v1 = vld [vmem:[#allocation0] sm:$0xf] }
   0xd   :  { %18 = vst [vmem:[#allocation3 + $0x8] sm:$0xf] %v16_v0  ;;  %20 = vst [vmem:[#allocation3] sm:$0xf] %v19_v1  ;;  %s26_s0 = smov 3  ;;  %s40_s11 = smov 3 }
   0xe   :  { %s21_s12 = smov 3  ;;  %s33_s13 = smov 3  ;;  %vm23_vm0 = vcmask 31744   ;;  %vm30_vm1 = vcmask 130144   ;;  %vm37_vm2 = vcmask 97344   ;;  %vm44_vm3 = vcmask 64544  }
   0xf   :  { %s82_s14 = smov 12   ;;  %s83_s15 = smov 4  }
  0x10   :  { %s84_s16 = smov 8  }
  0x14   :  { %v27_v2 = vld [vmem:[#allocation3 + $0x3] ss:$8 sm:%s26_s0]   ;;  %v41_v3 = vld [vmem:[#allocation3 + $0x1] ss:$8 sm:%s40_s11]   ;;  %v22_v4 = vld [vmem:[#allocation3] ss:$8 sm:%s21_s12]  }
  0x15   :  { %28 = vrot.lane.b32.xlu0 %v27_v2, %s82_s14  ;;  %42 = vrot.lane.b32.xlu1 %v41_v3, %s83_s15  ;;  %v34_v5 = vld [vmem:[#allocation3 + $0x2] ss:$8 sm:%s33_s13]   ;;  %24 = vst.msk [vmem:[#allocation2] sm:$0x3] %vm23_vm0, %v22_v4  }
  0x19   :  { %35 = vrot.lane.b32.xlu0 %v34_v5, %s84_s16 }
  0x87   :  { %v29_v6 = vpop.permute.xlu0 %28   ;;  %v43_v7 = vpop.permute.xlu1 %42  }
  0x88   :  { %31 = vst.msk [vmem:[#allocation2] sm:$0x3] %vm30_vm1, %v29_v6  }
  0x8b   :  { %v36_v8 = vpop.permute.xlu0 %35  }
  0x8c   :  { %38 = vst.msk [vmem:[#allocation2] sm:$0x3] %vm37_vm2, %v36_v8  }
  0x8d   :  { %45 = vst.msk [vmem:[#allocation2] sm:$0x3] %vm44_vm3, %v43_v7  }
  0x94   :  { %v50_v9 = vld [vmem:[#allocation2] sm:$0x3] }
  0x95   :  { %53 = vst [vmem:[%s102_s1] sm:$0x3] %v50_v9 }
  0x96   :  { %54 = vsyncpa [#allocation1], 1 }

// kernel: squeeze.5
= control target key start
LH: loop header
LB: loop body
LE: loop exit
PB: predicated region body
PF: predicated region fallthrough
CT: control target
= control target key end

     0   :  { %2 = vsyncpa [#allocation1], 0  ;;  %s104_s6 = smov [#allocation0]   ;;  %s128_s0 = inlined_call_operand.hbm [shape: f32[2,1,8,8], index: 0, kind: input, shape index: {}]   ;;  %s129_s1 = inlined_call_operand.vmem [shape: f32[2,64], index: 1, kind: output, shape index: {}]  }
   0x1   :  { %s7_s7 = sshll.u32 %s104_s6, 4  ;;  %s8_s7 = int_to_ptr.vmem [resolvable:$true] %s7_s7 }
   0x2   :  { %s90_s8 = scalar_lea.vmem %s8_s7, 256  ;;  %p95_p1 = scmp.lt.s32.totalorder %s8_s7, %s8_s7 }
   0x3   :  { %p91_p0 = scmp.ne.s32.totalorder %s8_s7, %s90_s8  ;;  %p96_p2 = scmp.lt.s32.totalorder %s90_s8, %s90_s8 }
   0x5   :  { %p97_p3 = por %p96_p2, %p95_p1 }
   0x7   :  { %p98_p4 = pnand %p97_p3, %p91_p0 }
   0x9   :  { %101 = shalt.err (!%p98_p4)
}
   0xa   :  { %10 = dma.hbm_to_vmem [thread:$0]  %s128_s0, 256, %s8_s7, [#allocation1]  }
   0xb   :  { %102 = dma.done.wait [#allocation1], 256  }
   0xc   :  { %103 = vsyncadd [#allocation1], 4294967040  ;;  %s17_s0 = smov 3  ;;  %s31_s11 = smov 3  ;;  %vm14_vm0 = vcmask 64512   ;;  %vm21_vm1 = vcmask 523712  }
   0xd   :  { %s24_s12 = smov 3  ;;  %s38_s13 = smov 3  ;;  %v18_v0 = vld [vmem:[#allocation0 + $0x7] ss:$8 sm:%s17_s0]   ;;  %v32_v1 = vld [vmem:[#allocation0 + $0x5] ss:$8 sm:%s31_s11]  }
   0xe   :  { %s105_s14 = smov 56   ;;  %s106_s15 = smov 40   ;;  %v25_v2 = vld [vmem:[#allocation0 + $0x6] ss:$8 sm:%s24_s12]   ;;  %v39_v3 = vld [vmem:[#allocation0 + $0x4] ss:$8 sm:%s38_s13]  }
   0xf   :  { %19 = vrot.lane.b32.xlu0 %v18_v0, %s105_s14  ;;  %33 = vrot.lane.b32.xlu1 %v32_v1, %s106_s15  ;;  %s12_s16 = smov 3  ;;  %s45_s17 = smov 3  ;;  %vm28_vm2 = vcmask 458112   ;;  %vm35_vm3 = vcmask 392512   ;;  %vm42_vm4 = vcmask 326912   ;;  %vm49_vm5 = vcmask 261312  }
  0x10   :  { %v13_v4 = vld [vmem:[#allocation0] ss:$8 sm:%s12_s16]   ;;  %s52_s18 = smov 3  ;;  %s107_s19 = smov 48   ;;  %v46_v5 = vld [vmem:[#allocation0 + $0x3] ss:$8 sm:%s45_s17]  }
  0x11   :  { %15 = vst.msk [vmem:[#allocation2] sm:$0x3] %vm14_vm0, %v13_v4   ;;  %s108_s20 = smov 32   ;;  %v53_v6 = vld [vmem:[#allocation0 + $0x2] ss:$8 sm:%s52_s18]   ;;  %s59_s21 = smov 3 }
  0x12   :  { %s109_s22 = smov 24   ;;  %s110_s23 = smov 16   ;;  %v60_v7 = vld [vmem:[#allocation0 + $0x1] ss:$8 sm:%s59_s21]   ;;  %vm56_vm6 = vcmask 195712   ;;  %vm63_vm7 = vcmask 130112  }
  0x13   :  { %26 = vrot.lane.b32.xlu0 %v25_v2, %s107_s19  ;;  %40 = vrot.lane.b32.xlu1 %v39_v3, %s108_s20  ;;  %s111_s24 = smov 8  }
  0x17   :  { %47 = vrot.lane.b32.xlu0 %v46_v5, %s109_s22  ;;  %54 = vrot.lane.b32.xlu1 %v53_v6, %s110_s23 }
  0x1b   :  { %61 = vrot.lane.b32.xlu0 %v60_v7, %s111_s24 }
  0x81   :  { %v20_v8 = vpop.permute.xlu0 %19   ;;  %v34_v9 = vpop.permute.xlu1 %33  }
  0x82   :  { %22 = vst.msk [vmem:[#allocation2] sm:$0x3] %vm21_vm1, %v20_v8  }
  0x85   :  { %v27_v10 = vpop.permute.xlu0 %26   ;;  %v41_v11 = vpop.permute.xlu1 %40  }
  0x86   :  { %29 = vst.msk [vmem:[#allocation2] sm:$0x3] %vm28_vm2, %v27_v10  }
  0x87   :  { %36 = vst.msk [vmem:[#allocation2] sm:$0x3] %vm35_vm3, %v34_v9  }
  0x88   :  { %43 = vst.msk [vmem:[#allocation2] sm:$0x3] %vm42_vm4, %v41_v11  }
  0x89   :  { %v48_v12 = vpop.permute.xlu0 %47   ;;  %v55_v13 = vpop.permute.xlu1 %54  }
  0x8a   :  { %50 = vst.msk [vmem:[#allocation2] sm:$0x3] %vm49_vm5, %v48_v12  }
  0x8b   :  { %57 = vst.msk [vmem:[#allocation2] sm:$0x3] %vm56_vm6, %v55_v13  }
  0x8d   :  { %v62_v14 = vpop.permute.xlu0 %61  }
  0x8e   :  { %64 = vst.msk [vmem:[#allocation2] sm:$0x3] %vm63_vm7, %v62_v14  }
  0x95   :  { %v69_v15 = vld [vmem:[#allocation2] sm:$0x3] }
  0x96   :  { %72 = vst [vmem:[%s129_s1] sm:$0x3] %v69_v15 }
  0x97   :  { %73 = vsyncpa [#allocation1], 1 }

// kernel: squeeze.4
= control target key start
LH: loop header
LB: loop body
LE: loop exit
PB: predicated region body
PF: predicated region fallthrough
CT: control target
= control target key end

     0   :  { %s8_s6 = smov 3  ;;  %s11_s7 = smov 12  ;;  %vm13_vm0 = vcmask 1043458   ;;  %vm3_vm1 = vcmask 130048   ;;  %vm17_vm2 = vcmask 1048448   ;;  %vm31_vm3 = vcmask 917248   ;;  %s216_s0 = inlined_call_operand.vmem [shape: f32[2,1,16,16], index: 0, kind: input, shape index: {}]   ;;  %s217_s1 = inlined_call_operand.vmem [shape: f32[2,256], index: 1, kind: output, shape index: {}]  }
   0x1   :  { %v119_v0 = vld [vmem:[%s216_s0 + $0x7] ss:$16 sm:%s8_s6]   ;;  %v120_v1 = vld [vmem:[%s216_s0 - $0x11] ss:$16 sm:%s11_s7]   ;;  %s36_s12 = smov 3  ;;  %s39_s15 = smov 12 }
   0x2   :  { %v14_v2 = vsel %vm13_vm0, %v120_v1, %v119_v0  ;;  %v123_v3 = vld [vmem:[%s216_s0 + $0x5] ss:$16 sm:%s36_s12]   ;;  %s141_s16 = smov 112   ;;  %v124_v4 = vld [vmem:[%s216_s0 - $0x13] ss:$16 sm:%s39_s15]   ;;  %s22_s19 = smov 3 }
   0x3   :  { %15 = vrot.lane.b32.xlu0 %v14_v2, %s141_s16  ;;  %s25_s20 = smov 12  ;;  %v42_v5 = vsel %vm13_vm0, %v124_v4, %v123_v3  ;;  %v121_v6 = vld [vmem:[%s216_s0 + $0x6] ss:$16 sm:%s22_s19]   ;;  %s50_s25 = smov 3  ;;  %vm45_vm4 = vcmask 786048   ;;  %vm59_vm5 = vcmask 654848  }
   0x4   :  { %v122_v7 = vld [vmem:[%s216_s0 - $0x12] ss:$16 sm:%s25_s20]   ;;  %s142_s26 = smov 80   ;;  %v125_v9 = vld [vmem:[%s216_s0 + $0x4] ss:$16 sm:%s50_s25]   ;;  %s53_s29 = smov 12 }
   0x5   :  { %43 = vrot.lane.b32.xlu1 %v42_v5, %s142_s26  ;;  %v28_v8 = vsel %vm13_vm0, %v122_v7, %v121_v6  ;;  %v126_v10 = vld [vmem:[%s216_s0 - $0x14] ss:$16 sm:%s53_s29]   ;;  %s64_s3 = smov 3  ;;  %s67_s4 = smov 12  ;;  %vm73_vm6 = vcmask 523648   ;;  %vm87_vm7 = vcmask 392448  }
   0x6   :  { %s143_s5 = smov 96   ;;  %v56_v11 = vsel %vm13_vm0, %v126_v10, %v125_v9  ;;  %v127_v12 = vld [vmem:[%s216_s0 + $0x3] ss:$16 sm:%s64_s3]   ;;  %s78_s8 = smov 3  ;;  %v128_v13 = vld [vmem:[%s216_s0 - $0x15] ss:$16 sm:%s67_s4]  }
   0x7   :  { %29 = vrot.lane.b32.xlu0 %v28_v8, %s143_s5  ;;  %v129_v14 = vld [vmem:[%s216_s0 + $0x2] ss:$16 sm:%s78_s8]   ;;  %s81_s13 = smov 12  ;;  %s144_s14 = smov 64   ;;  %v70_v15 = vsel %vm13_vm0, %v128_v13, %v127_v12  ;;  %vm101_vm8 = vcmask 261248  }
   0x8   :  { %v130_v16 = vld [vmem:[%s216_s0 - $0x16] ss:$16 sm:%s81_s13]   ;;  %s92_s17 = smov 3  ;;  %s95_s18 = smov 12 }
   0x9   :  { %57 = vrot.lane.b32.xlu1 %v56_v11, %s144_s14  ;;  %v84_v17 = vsel %vm13_vm0, %v130_v16, %v129_v14  ;;  %v131_v18 = vld [vmem:[%s216_s0 + $0x1] ss:$16 sm:%s92_s17]   ;;  %s145_s23 = smov 48   ;;  %v2_v20 = vld [vmem:[%s216_s0] ss:$8 sm:$0xf]  }
   0xa   :  { %v132_v19 = vld [vmem:[%s216_s0 - $0x17] ss:$16 sm:%s95_s18]   ;;  %4 = vst.msk [vmem:[#allocation0] ss:$8 sm:$0x3] %vm3_vm1, %v2_v20   ;;  %s146_s0 = smov 32  }
   0xb   :  { %71 = vrot.lane.b32.xlu0 %v70_v15, %s145_s23  ;;  %v98_v21 = vsel %vm13_vm0, %v132_v19, %v131_v18  ;;  %6 = vst.msk [vmem:[#allocation0 - $0xf] ss:$8 sm:$0xc] %vm3_vm1, %v2_v20   ;;  %s147_s26 = smov 16  }
   0xd   :  { %85 = vrot.lane.b32.xlu1 %v84_v17, %s146_s0 }
   0xf   :  { %99 = vrot.lane.b32.xlu0 %v98_v21, %s147_s26 }
  0x75   :  { %v16_v22 = vpop.permute.xlu0 %15  }
  0x76   :  { %18 = vst.msk [vmem:[#allocation0] sm:$0x3] %vm17_vm2, %v16_v22   ;;  %20 = vst.msk [vmem:[#allocation0 + $0x6] sm:$0xc] %vm17_vm2, %v16_v22  }
  0x77   :  { %v44_v23 = vpop.permute.xlu1 %43  }
  0x79   :  { %v30_v24 = vpop.permute.xlu0 %29  }
  0x7a   :  { %32 = vst.msk [vmem:[#allocation0] sm:$0x3] %vm31_vm3, %v30_v24   ;;  %34 = vst.msk [vmem:[#allocation0 + $0x6] sm:$0xc] %vm31_vm3, %v30_v24  }
  0x7b   :  { %46 = vst.msk [vmem:[#allocation0] sm:$0x3] %vm45_vm4, %v44_v23   ;;  %48 = vst.msk [vmem:[#allocation0 + $0x6] sm:$0xc] %vm45_vm4, %v44_v23   ;;  %v58_v25 = vpop.permute.xlu1 %57  }
  0x7c   :  { %60 = vst.msk [vmem:[#allocation0] sm:$0x3] %vm59_vm5, %v58_v25   ;;  %62 = vst.msk [vmem:[#allocation0 + $0x6] sm:$0xc] %vm59_vm5, %v58_v25  }
  0x7d   :  { %v72_v26 = vpop.permute.xlu0 %71  }
  0x7e   :  { %74 = vst.msk [vmem:[#allocation0] sm:$0x3] %vm73_vm6, %v72_v26   ;;  %76 = vst.msk [vmem:[#allocation0 + $0x6] sm:$0xc] %vm73_vm6, %v72_v26  }
  0x7f   :  { %v86_v27 = vpop.permute.xlu1 %85  }
  0x80   :  { %88 = vst.msk [vmem:[#allocation0] sm:$0x3] %vm87_vm7, %v86_v27   ;;  %90 = vst.msk [vmem:[#allocation0 + $0x6] sm:$0xc] %vm87_vm7, %v86_v27  }
  0x81   :  { %v100_v28 = vpop.permute.xlu0 %99  }
  0x82   :  { %102 = vst.msk [vmem:[#allocation0] sm:$0x3] %vm101_vm8, %v100_v28   ;;  %104 = vst.msk [vmem:[#allocation0 + $0x6] sm:$0xc] %vm101_vm8, %v100_v28  }
  0x89   :  { %v109_v29 = vld [vmem:[#allocation0] sm:$0x3]  ;;  %v114_v30 = vld [vmem:[#allocation0 + $0x8] sm:$0x3] }
  0x8a   :  { %112 = vst [vmem:[%s217_s1] sm:$0x3] %v109_v29  ;;  %133 = vst [vmem:[%s217_s1 + $0x2] sm:$0x3] %v114_v30 }

// kernel: _forward_impl.1
= control target key start
LH: loop header
LB: loop body
LE: loop exit
PB: predicated region body
PF: predicated region fallthrough
CT: control target
= control target key end

     0   :  { %8 = vsyncpa [#allocation3], 0  ;;  %s472_s0 = inlined_call_operand.vmem [shape: f32[2,256], index: 0, kind: input, shape index: {}]   ;;  %s473_s1 = inlined_call_operand.vmem [shape: f32[2,80], index: 1, kind: input, shape index: {}]   ;;  %s474_s2 = inlined_call_operand.hbm [shape: f32[80,512], index: 2, kind: input, shape index: {}]   ;;  %s475_s3 = inlined_call_operand.hbm [shape: f32[1,1], index: 3, kind: output, shape index: {}]  }
   0x1   :  { %9 = vsyncpa [#allocation4], 0  ;;  %s425_s12 = smov [#allocation2]  }
   0x2   :  { %s19_s13 = sshll.u32 %s425_s12, 4  ;;  %s20_s13 = int_to_ptr.vmem [resolvable:$true] %s19_s13 }
   0x3   :  { %s389_s14 = scalar_lea.vmem %s20_s13, 5120  ;;  %p394_p1 = scmp.lt.s32.totalorder %s20_s13, %s20_s13 }
   0x4   :  { %p390_p0 = scmp.ne.s32.totalorder %s20_s13, %s389_s14  ;;  %p395_p2 = scmp.lt.s32.totalorder %s389_s14, %s389_s14 }
   0x6   :  { %p396_p3 = por %p395_p2, %p394_p1 }
   0x8   :  { %p397_p4 = pnand %p396_p3, %p390_p0 }
   0xa   :  { %400 = shalt.err (!%p397_p4)
}
   0xb   :  { %s426_s15 = smov 512   ;;  %s427_s16 = smov 32  }
   0xc   :  { %25 = dma.hbm_to_vmem [thread:$0]  %s474_s2, 5120, %s20_s13, [#allocation3], %s426_s15, %s426_s15, %s427_s16  }
   0xd   :  { %421 = dma.done.wait [#allocation3], 5120  }
   0xe   :  { %422 = vsyncadd [#allocation3], 4294962176  ;;  %v428_v0 = vmov 0.0   ;;  %v93_v1 = vld [vmem:[#allocation2 + $0x128] sm:$0xff]  ;;  %v92_v2 = vld [vmem:[#allocation2 + $0x120] sm:$0xff]  ;;  %vm96_vm0 = vcmask 654336  }
   0xf   :  { %164 = vmatprep.mubr.f32.mxu0 %v428_v0  ;;  %235 = vmatprep.mubr.f32.mxu1 %v428_v0  ;;  %v89_v3 = vld [vmem:[#allocation2 + $0x108] sm:$0xff]  ;;  %v95_v4 = vld [vmem:[#allocation2 + $0x138] sm:$0xff]  ;;  %v88_v5 = vld [vmem:[#allocation2 + $0x100] sm:$0xff]  ;;  %vm41_vm1 = vcmask 1041408   ;;  %s429_s25 = smov [#allocation5]   ;;  %vm334_vm2 = vcmask 0  }
  0x10   :  { %112 = vmatprep.subr.mxu0 %v93_v1  ;;  %v94_v6 = vld [vmem:[#allocation2 + $0x130] sm:$0xff]  ;;  %183 = vmatprep.subr.mxu1 %v95_v4  ;;  %v85_v7 = vld [vmem:[#allocation2 + $0xe8] sm:$0xff]  ;;  %v91_v8 = vld [vmem:[#allocation2 + $0x118] sm:$0xff]  ;;  %s342_s26 = sshll.u32 %s429_s25, 4  ;;  %s343_s26 = int_to_ptr.vmem [resolvable:$true] %s342_s26 }
  0x11   :  { %113 = vmatpush1.msra.mxu0 %v92_v2  ;;  %184 = vmatpush1.msra.mxu1 %v94_v6  ;;  %v84_v9 = vld [vmem:[#allocation2 + $0xe0] sm:$0xff]  ;;  %v90_v10 = vld [vmem:[#allocation2 + $0x110] sm:$0xff]  ;;  %v87_v11 = vld [vmem:[#allocation2 + $0xf8] sm:$0xff]  ;;  %s401_s27 = scalar_lea.vmem %s343_s26, 16  ;;  %s405_s28 = scalar_lea.vmem %s343_s26, 32 }
  0x12   :  { %114 = vmatprep.subr.mxu0 %v89_v3  ;;  %185 = vmatprep.subr.mxu1 %v91_v8  ;;  %v81_v12 = vld [vmem:[#allocation2 + $0xc8] sm:$0xff]  ;;  %v86_v13 = vld [vmem:[#allocation2 + $0xf0] sm:$0xff]  ;;  %v80_v14 = vld [vmem:[#allocation2 + $0xc0] sm:$0xff]  ;;  %p402_p5 = scmp.ne.s32.totalorder %s343_s26, %s401_s27  ;;  %p406_p6 = scmp.lt.s32.totalorder %s343_s26, %s343_s26 }
  0x13   :  { %115 = vmatpush1.msra.mxu0 %v88_v5  ;;  %186 = vmatpush1.msra.mxu1 %v90_v10  ;;  %v83_v15 = vld [vmem:[#allocation2 + $0xd8] sm:$0xff]  ;;  %v77_v16 = vld [vmem:[#allocation2 + $0xa8] sm:$0xff]  ;;  %v82_v17 = vld [vmem:[#allocation2 + $0xd0] sm:$0xff]  ;;  %p407_p7 = scmp.lt.s32.totalorder %s405_s28, %s401_s27 }
  0x14   :  { %116 = vmatprep.subr.mxu0 %v85_v7  ;;  %187 = vmatprep.subr.mxu1 %v87_v11  ;;  %v76_v18 = vld [vmem:[#allocation2 + $0xa0] sm:$0xff]  ;;  %v79_v19 = vld [vmem:[#allocation2 + $0xb8] sm:$0xff]  ;;  %v73_v20 = vld [vmem:[#allocation2 + $0x88] sm:$0xff] }
  0x15   :  { %117 = vmatpush1.msra.mxu0 %v84_v9  ;;  %188 = vmatpush1.msra.mxu1 %v86_v13  ;;  %v78_v21 = vld [vmem:[#allocation2 + $0xb0] sm:$0xff]  ;;  %v72_v22 = vld [vmem:[#allocation2 + $0x80] sm:$0xff]  ;;  %v75_v23 = vld [vmem:[#allocation2 + $0x98] sm:$0xff]  ;;  %p408_p8 = por %p407_p7, %p406_p6 }
  0x16   :  { %118 = vmatprep.subr.mxu0 %v81_v12  ;;  %189 = vmatprep.subr.mxu1 %v83_v15  ;;  %v69_v24 = vld [vmem:[#allocation2 + $0x68] sm:$0xff]  ;;  %v74_v25 = vld [vmem:[#allocation2 + $0x90] sm:$0xff]  ;;  %v68_v26 = vld [vmem:[#allocation2 + $0x60] sm:$0xff] }
  0x17   :  { %119 = vmatpush1.msra.mxu0 %v80_v14  ;;  %190 = vmatpush1.msra.mxu1 %v82_v17  ;;  %v71_v27 = vld [vmem:[#allocation2 + $0x78] sm:$0xff]  ;;  %v65_v28 = vld [vmem:[#allocation2 + $0x48] sm:$0xff]  ;;  %v70_v29 = vld [vmem:[#allocation2 + $0x70] sm:$0xff]  ;;  %p409_p9 = pnand %p408_p8, %p402_p5 }
  0x18   :  { %120 = vmatprep.subr.mxu0 %v77_v16  ;;  %191 = vmatprep.subr.mxu1 %v79_v19  ;;  %v64_v30 = vld [vmem:[#allocation2 + $0x40] sm:$0xff]  ;;  %v67_v31 = vld [vmem:[#allocation2 + $0x58] sm:$0xff]  ;;  %v61_v32 = vld [vmem:[#allocation2 + $0x28] sm:$0xff] }
  0x19   :  { %121 = vmatpush1.msra.mxu0 %v76_v18  ;;  %192 = vmatpush1.msra.mxu1 %v78_v21  ;;  %v66_v33 = vld [vmem:[#allocation2 + $0x50] sm:$0xff]  ;;  %v60_v34 = vld [vmem:[#allocation2 + $0x20] sm:$0xff]  ;;  %v63_v35 = vld [vmem:[#allocation2 + $0x38] sm:$0xff] }
  0x1a   :  { %122 = vmatprep.subr.mxu0 %v73_v20  ;;  %193 = vmatprep.subr.mxu1 %v75_v23  ;;  %v57_v36 = vld [vmem:[#allocation2 + $0x8] sm:$0xff]  ;;  %v62_v37 = vld [vmem:[#allocation2 + $0x30] sm:$0xff]  ;;  %v56_v38 = vld [vmem:[#allocation2] sm:$0xff] }
  0x1b   :  { %123 = vmatpush1.msra.mxu0 %v72_v22  ;;  %194 = vmatpush1.msra.mxu1 %v74_v25  ;;  %v59_v39 = vld [vmem:[#allocation2 + $0x18] sm:$0xff]  ;;  %v55_v40 = vld [vmem:[%s473_s1] sm:$0x3]  ;;  %v58_v41 = vld [vmem:[#allocation2 + $0x10] sm:$0xff] }
  0x1c   :  { %124 = vmatprep.subr.mxu0 %v69_v24  ;;  %195 = vmatprep.subr.mxu1 %v71_v27  ;;  %v351_v42 = vld.sshfl [vmem:[%s472_s0] sm:$0x33 pattern:$0x76325410] }
  0x1d   :  { %125 = vmatpush1.msra.mxu0 %v68_v26  ;;  %196 = vmatpush1.msra.mxu1 %v70_v29  ;;  %v38_v43 = vcombine.high %v351_v42, %v351_v42  ;;  %v42_v44 = vsel %vm41_vm1, %v351_v42, 0.0 }
  0x1e   :  { %126 = vmatprep.subr.mxu0 %v65_v28  ;;  %197 = vmatprep.subr.mxu1 %v67_v31 }
  0x1f   :  { %127 = vmatpush1.msra.mxu0 %v64_v30  ;;  %198 = vmatpush1.msra.mxu1 %v66_v33  ;;  %v43_v45 = vsel %vm41_vm1, %v38_v43, 0.0 }
  0x20   :  { %128 = vmatprep.subr.mxu0 %v61_v32  ;;  %199 = vmatprep.subr.mxu1 %v63_v35  ;;  %v44_v46 = vadd.f32 %v43_v45, %v42_v44 }
  0x21   :  { %129 = vmatpush1.msra.mxu0 %v60_v34  ;;  %200 = vmatpush1.msra.mxu1 %v62_v37 }
  0x22   :  { %130 = vmatprep.subr.mxu0 %v57_v36  ;;  %201 = vmatprep.subr.mxu1 %v59_v39 }
  0x23   :  { %131 = vmatpush1.msra.mxu0 %v56_v38  ;;  %202 = vmatpush1.msra.mxu1 %v58_v41 }
  0x24   :  { %352 = vmatmul.mubr.msk.f32.vlgmr.msra.gmra.mxu0 %vm96_vm0, %v55_v40  ;;  %353 = vmatmul.mubr.msk.f32.vlgmr.msra.gmra.mxu1 %vm96_vm0, %v55_v40 }
  0x25   :  { %45 = vadd.xlane.f32.xlu0 %v44_v46 }
  0xae   :  { %v46_v1 = vpop.xlane.xlu0 %45 }
  0xaf   :  { %v47_v4 = vrot.slane %v46_v1, 4 }
  0xb1   :  { %v48_v8 = vadd.f32 %v47_v4, %v46_v1 }
  0xb3   :  { %v49_v10 = vrot.slane %v48_v8, 2 }
  0xb5   :  { %v50_v11 = vadd.f32 %v49_v10, %v48_v8 }
  0xb7   :  { %v51_v12 = vrot.slane %v50_v11, 1 }
  0xb9   :  { %v52_v13 = vadd.f32 %v51_v12, %v50_v11 }
  0xbb   :  { %354 = vpush %v52_v13 }
  0xe4   :  { %v166_v47 = vpop.f32.mrf.mxu0  ;;  %v237_v48 = vpop.f32.mrf.mxu1 }
  0xe5   :  { %369 = vtanh.f32 %v166_v47 }
  0xe6   :  { %v168_v49 = vpop.f32.mrf.mxu0  ;;  %371 = vtanh.f32 %v237_v48  ;;  %v239_v50 = vpop.f32.mrf.mxu1 }
  0xe7   :  { %373 = vtanh.f32 %v168_v49 }
  0xe8   :  { %375 = vtanh.f32 %v239_v50 }
  0xec   :  { %s355_s0 = spop %354 }
  0xed   :  { %v54_v44 = vstv %s355_s0 }
  0xf2   :  { %v370_v51 = vpop.eup %369 }
  0xf3   :  { %v372_v52 = vpop.eup %371  ;;  %v259_v53 = vmul.f32 %v370_v51, %v351_v42  ;;  %v246_v57 = vsel %vm41_vm1, %v370_v51, 0.0 }
  0xf4   :  { %v374_v54 = vpop.eup %373  ;;  %v302_v55 = vmul.f32 %v372_v52, %v351_v42  ;;  %v289_v6 = vsel %vm41_vm1, %v372_v52, 0.0 }
  0xf5   :  { %v376_v56 = vpop.eup %375  ;;  %v247_v58 = vsel %vm41_vm1, %v374_v54, 0.0  ;;  %v260_v59 = vmul.f32 %v374_v54, %v38_v43  ;;  %v261_v63 = vsel %vm41_vm1, %v259_v53, 0.0 }
  0xf6   :  { %v248_v60 = vadd.f32 %v247_v58, %v246_v57  ;;  %v303_v61 = vmul.f32 %v376_v56, %v38_v43  ;;  %v304_v62 = vsel %vm41_vm1, %v302_v55, 0.0  ;;  %v290_v7 = vsel %vm41_vm1, %v376_v56, 0.0 }
  0xf7   :  { %v262_v0 = vsel %vm41_vm1, %v260_v59, 0.0  ;;  %v291_v9 = vadd.f32 %v290_v7, %v289_v6 }
  0xf8   :  { %249 = vadd.xlane.f32.xlu0 %v248_v60  ;;  %v263_v2 = vadd.f32 %v262_v0, %v261_v63  ;;  %v305_v3 = vsel %vm41_vm1, %v303_v61, 0.0 }
  0xf9   :  { %v306_v5 = vadd.f32 %v305_v3, %v304_v62 }
  0xfa   :  { %264 = vadd.xlane.f32.xlu1 %v263_v2 }
  0xfc   :  { %307 = vadd.xlane.f32.xlu0 %v306_v5 }
  0xfe   :  { %292 = vadd.xlane.f32.xlu1 %v291_v9 }
 0x181   :  { %v250_v14 = vpop.xlane.xlu0 %249 }
 0x182   :  { %v251_v15 = vrot.slane %v250_v14, 4 }
 0x183   :  { %v265_v16 = vpop.xlane.xlu1 %264 }
 0x184   :  { %v252_v17 = vadd.f32 %v251_v15, %v250_v14  ;;  %v266_v18 = vrot.slane %v265_v16, 4 }
 0x185   :  { %v308_v19 = vpop.xlane.xlu0 %307 }
 0x186   :  { %v253_v20 = vrot.slane %v252_v17, 2  ;;  %v267_v21 = vadd.f32 %v266_v18, %v265_v16  ;;  %v309_v22 = vrot.slane %v308_v19, 4 }
 0x187   :  { %v293_v23 = vpop.xlane.xlu1 %292 }
 0x188   :  { %v268_v24 = vrot.slane %v267_v21, 2  ;;  %v310_v25 = vadd.f32 %v309_v22, %v308_v19  ;;  %v294_v26 = vrot.slane %v293_v23, 4  ;;  %v254_v27 = vadd.f32 %v253_v20, %v252_v17 }
 0x18a   :  { %v311_v28 = vrot.slane %v310_v25, 2  ;;  %v295_v29 = vadd.f32 %v294_v26, %v293_v23  ;;  %v255_v30 = vrot.slane %v254_v27, 1  ;;  %v269_v31 = vadd.f32 %v268_v24, %v267_v21 }
 0x18c   :  { %v312_v32 = vadd.f32 %v311_v28, %v310_v25  ;;  %v296_v33 = vrot.slane %v295_v29, 2  ;;  %v256_v34 = vadd.f32 %v255_v30, %v254_v27  ;;  %v270_v35 = vrot.slane %v269_v31, 1 }
 0x18e   :  { %v297_v36 = vadd.f32 %v296_v33, %v295_v29  ;;  %356 = vpush %v256_v34  ;;  %v271_v37 = vadd.f32 %v270_v35, %v269_v31  ;;  %v313_v38 = vrot.slane %v312_v32, 1 }
 0x190   :  { %358 = vpush %v271_v37  ;;  %v298_v39 = vrot.slane %v297_v36, 1  ;;  %v314_v41 = vadd.f32 %v313_v38, %v312_v32 }
 0x192   :  { %v299_v40 = vadd.f32 %v298_v39, %v297_v36 }
 0x194   :  { %360 = vpush %v299_v40 }
 0x195   :  { %362 = vpush %v314_v41 }
 0x1bf   :  { %s357_s1 = spop %356 }
 0x1c0   :  { %v258_v42 = vstv %s357_s1 }
 0x1c1   :  { %v276_v43 = vadd.f32 512.0, %v258_v42  ;;  %s359_s22 = spop %358 }
 0x1c2   :  { %v273_v45 = vstv %s359_s22 }
 0x1c3   :  { %v274_v46 = vadd.f32 %v273_v45, %v54_v44  ;;  %v277_v47 = vmul.f32 0.5, %v276_v43 }
 0x1c5   :  { %v275_v48 = vmul.f32 0.5, %v274_v46  ;;  %s361_s23 = spop %360 }
 0x1c6   :  { %v301_v49 = vstv %s361_s23  ;;  %s363_s24 = spop %362 }
 0x1c7   :  { %v278_v50 = vsub.f32 %v277_v47, %v275_v48  ;;  %v279_v51 = vsub.f32 %v54_v44, %v275_v48  ;;  %v319_v52 = vadd.f32 512.0, %v301_v49  ;;  %v316_v53 = vstv %s363_s24 }
 0x1c8   :  { %v317_v56 = vadd.f32 %v316_v53, %v54_v44  ;;  %v280_v6 = vadd.f32 1.0, %v275_v48 }
 0x1c9   :  { %v281_v54 = vmul.f32 0.7, %v279_v51  ;;  %v320_v55 = vmul.f32 0.5, %v319_v52  ;;  %v283_v58 = vmul.f32 0.3, %v278_v50 }
 0x1ca   :  { %v318_v59 = vmul.f32 0.5, %v317_v56 }
 0x1cb   :  { %v282_v57 = vadd.f32 %v281_v54, %v275_v48 }
 0x1cc   :  { %v321_v61 = vsub.f32 %v320_v55, %v318_v59  ;;  %v322_v62 = vsub.f32 %v54_v44, %v318_v59  ;;  %v323_v7 = vadd.f32 1.0, %v318_v59 }
 0x1cd   :  { %v284_v60 = vadd.f32 %v283_v58, %v282_v57 }
 0x1ce   :  { %v324_v0 = vmul.f32 0.7, %v322_v62  ;;  %v326_v2 = vmul.f32 0.3, %v321_v61 }
 0x1cf   :  { %v285_v63 = vadd.f32 1.0, %v284_v60 }
 0x1d0   :  { %v325_v1 = vadd.f32 %v324_v0, %v318_v59 }
 0x1d1   :  { %377 = vrcp.f32 %v285_v63 }
 0x1d2   :  { %v327_v3 = vadd.f32 %v326_v2, %v325_v1 }
 0x1d4   :  { %v328_v4 = vadd.f32 1.0, %v327_v3 }
 0x1d6   :  { %379 = vrcp.f32 %v328_v4 }
 0x1de   :  { %v378_v5 = vpop.eup %377 }
 0x1df   :  { %v287_v8 = vmul.f32 %v378_v5, %v280_v6 }
 0x1e1   :  { %v288_v11 = vsub.f32 1.0, %v287_v8 }
 0x1e3   :  { %v380_v9 = vpop.eup %379 }
 0x1e4   :  { %v330_v10 = vmul.f32 %v380_v9, %v323_v7 }
 0x1e6   :  { %v331_v12 = vsub.f32 1.0, %v330_v10 }
 0x1e8   :  { %v332_v13 = vadd.f32 %v331_v12, %v288_v11 }
 0x1ea   :  { %v333_v14 = vmul.f32 0.5, %v332_v13 }
 0x1ec   :  { %335 = vst.msk [vmem:[#allocation5] sm:$0x1] %vm334_vm2, %v333_v14 }
 0x1ed   :  { %412 = shalt.err (!%p409_p9)
}
 0x1ee   :  { %345 = dma.vmem_to_hbm [thread:$0]  %s343_s26, 16, %s475_s3, [#allocation4]  }
 0x1ef   :  { %423 = dma.done.wait [#allocation4], 16  }
 0x1f0   :  { %424 = vsyncadd [#allocation4], 4294967280 }
 0x1f1   :  { %349 = vsyncpa [#allocation3], 1 }
 0x1f2   :  { %350 = vsyncpa [#allocation4], 1 }

</bundles_post_ra>
